<compile_context>
chip_gen: v7x
topology: tpu7x:2x2x1
jax: 0.10.0
libtpu: 0.0.40
codegen_flags: <defaults>
</compile_context>

<pallas_src>
import functools
import math

import jax
import jax.numpy as jnp
from jax.experimental import pallas as pl
from jax.experimental.pallas import tpu as pltpu


def _cosine_cutoff_kernel(r_ref, o_ref, *, cutoff: float):
    r = r_ref[...].astype(jnp.float32)
    out = 0.5 * jnp.cos((math.pi / cutoff) * r) + 0.5   # cos -> EUP slot (cheap)
    out = jnp.where(r < cutoff, out, 0.0)
    o_ref[...] = out.astype(o_ref.dtype)


def _round_up(x: int, m: int) -> int:
    return ((x + m - 1) // m) * m


def cosine_cutoff(r: jax.Array, cutoff: float, *, max_block_rows: int = 1024) -> jax.Array:
    """Elementwise cosine cutoff: 0.5*(cos(pi*r/cutoff)+1) * (r < cutoff)."""
    orig_shape = r.shape
    dtype = r.dtype

    flat = r.reshape(-1)                 # metadata-only
    n = flat.shape[0]
    if n == 0:
        return r

    # Lane width: largest of {512, 256, 128} that divides n (avoids any pad
    # copy entirely); otherwise fall back and pad < lanes elements (one copy).
    lanes = None
    for cand in (512, 256, 128):
        if n % cand == 0:
            lanes = cand
            break
    if lanes is None:
        lanes = 512 if n >= 512 else 128

    rows = pl.cdiv(n, lanes)
    padded_n = rows * lanes
    if padded_n != n:
        # Only hit when no 128-multiple divides n; pads <= lanes-1 elements.
        flat = jnp.pad(flat, (0, padded_n - n))
    slab = flat.reshape(rows, lanes)

    # Block rows: multiple of 16 (sublane-pack-safe for both f32 and bf16),
    # target ~8 grid steps for large inputs, capped at max_block_rows
    # (1024 x 512 f32 = 2 MiB per block).  If that exceeds the row count we
    # take the full row extent (legal: equals the array dim), giving grid=1.
    tm = min(max_block_rows, _round_up(pl.cdiv(rows, 8), 16), rows)

    grid = (pl.cdiv(rows, tm),)          # ragged last block handled by Pallas
    block_bytes = tm * lanes * slab.dtype.itemsize
    # in + out, double-buffered, plus headroom; safe on v5e/v6e/v7x.
    vmem_limit = max(16 << 20, min(4 * block_bytes + (4 << 20), 32 << 20))

    kernel = functools.partial(_cosine_cutoff_kernel, cutoff=float(cutoff))

    out_slab = pl.pallas_call(
        kernel,
        out_shape=jax.ShapeDtypeStruct((rows, lanes), dtype),
        grid_spec=pltpu.PrefetchScalarGridSpec(
            num_scalar_prefetch=0,
            grid=grid,
            in_specs=[pl.BlockSpec((tm, lanes), lambda i: (i, 0))],
            out_specs=pl.BlockSpec((tm, lanes), lambda i: (i, 0)),
        ),
        compiler_params=pltpu.CompilerParams(
            dimension_semantics=("parallel",),
            vmem_limit_bytes=vmem_limit,
        ),
    )(slab)

    out_flat = out_slab.reshape(-1)
    if padded_n != n:
        out_flat = out_flat[:n]
    return out_flat.reshape(orig_shape)


def _reference(r, cutoff):
    r32 = r.astype(jnp.float32)
    out = 0.5 * (jnp.cos(math.pi * r32 / cutoff) + 1.0)
    out = out * (r32 < cutoff).astype(jnp.float32)
    return out.astype(r.dtype)


if __name__ == "__main__":
    key = jax.random.PRNGKey(0)
    cutoff = 5.0

    # Case 1: nice 2-D shape (distances in [0, 2*cutoff) so the mask does work).
    k1, k2 = jax.random.split(key)
    r1 = jax.random.uniform(k1, (256, 128), dtype=jnp.float32) * (2.0 * cutoff)
    out1 = jax.block_until_ready(cosine_cutoff(r1, cutoff))
    assert out1.shape == r1.shape and out1.dtype == r1.dtype
    assert jnp.allclose(out1, _reference(r1, cutoff), atol=1e-6, rtol=1e-6)

    # Case 2: odd shape exercising the flatten/pad + ragged-rows path.
    r2 = jax.random.uniform(k2, (3, 50, 7), dtype=jnp.float32) * (2.0 * cutoff)
    out2 = jax.block_until_ready(cosine_cutoff(r2, cutoff))
    assert out2.shape == r2.shape
    assert jnp.allclose(out2, _reference(r2, cutoff), atol=1e-6, rtol=1e-6)

    # Case 3: bf16 I/O, f32 compute inside the kernel.
    r3 = r1.astype(jnp.bfloat16)
    out3 = jax.block_until_ready(cosine_cutoff(r3, cutoff))
    assert out3.dtype == jnp.bfloat16
    assert jnp.allclose(out3.astype(jnp.float32),
                        _reference(r3, cutoff).astype(jnp.float32),
                        atol=1e-2, rtol=1e-2)

    print("KERNEL_OK")
</pallas_src>

<mosaic_0001>
module attributes {stable_mosaic.version = 11 : i64} {
  func.func @_cosine_cutoff_kernel(%arg0: i32, %arg1: memref<16x512xf32, #tpu.memory_space<vmem>>, %arg2: memref<16x512xf32, #tpu.memory_space<vmem>>) attributes {dimension_semantics = [#tpu.dimension_semantics<parallel>], iteration_bounds = array<i64: 4>, scalar_prefetch = 0 : i64, scratch_operands = 0 : i64, tpu.core_type = #tpu.core_type<tc>, window_params = [{transform_indices = @transform_0, window_bounds = array<i64: 16, 512>}, {transform_indices = @transform_1, window_bounds = array<i64: 16, 512>}]} {
    %c0 = arith.constant 0 : index
    %c0_0 = arith.constant 0 : index
    %0 = vector.load %arg1[%c0, %c0_0] : memref<16x512xf32, #tpu.memory_space<vmem>>, vector<16x512xf32>
    %cst = arith.constant 0.628318548 : f32
    %1 = vector.broadcast %cst : f32 to vector<16x512xf32>
    %2 = arith.mulf %1, %0 : vector<16x512xf32>
    %3 = math.cos %2 : vector<16x512xf32>
    %cst_1 = arith.constant 5.000000e-01 : f32
    %4 = vector.broadcast %cst_1 : f32 to vector<16x512xf32>
    %5 = arith.mulf %4, %3 : vector<16x512xf32>
    %cst_2 = arith.constant 5.000000e-01 : f32
    %6 = vector.broadcast %cst_2 : f32 to vector<16x512xf32>
    %7 = arith.addf %5, %6 : vector<16x512xf32>
    %cst_3 = arith.constant 5.000000e+00 : f32
    %8 = vector.broadcast %cst_3 : f32 to vector<16x512xf32>
    %9 = arith.cmpf olt, %0, %8 : vector<16x512xf32>
    %cst_4 = arith.constant 0.000000e+00 : f32
    %10 = vector.broadcast %cst_4 : f32 to vector<16x512xf32>
    %11 = arith.select %9, %7, %10 : vector<16x512xi1>, vector<16x512xf32>
    %c0_5 = arith.constant 0 : index
    %c0_6 = arith.constant 0 : index
    %12 = vector.load %arg2[%c0_5, %c0_6] : memref<16x512xf32, #tpu.memory_space<vmem>>, vector<16x512xf32>
    tpu.vector_store %arg2[%c0_5, %c0_6], %11 {strides = array<i32>} : memref<16x512xf32, #tpu.memory_space<vmem>>, vector<16x512xf32>,
    return
  }
  func.func @transform_0(%arg0: i32) -> (i32, i32) {
    %c0_i32 = arith.constant 0 : i32
    %c0_i32_0 = arith.constant 0 : i32
    return %arg0, %c0_i32 : i32, i32
  }
  func.func @transform_1(%arg0: i32) -> (i32, i32) {
    %c0_i32 = arith.constant 0 : i32
    %c0_i32_0 = arith.constant 0 : i32
    return %arg0, %c0_i32 : i32, i32
  }
}

</mosaic_0001>

<bundles_post_ra>
// kernel: tpu_custom_call.1
= control target key start
LH: loop header
LB: loop body
LE: loop exit
PB: predicated region body
PF: predicated region fallthrough
CT: control target
= control target key end

     0   :  { %6 = vsyncpa [#allocation3], 0  ;;  %s2289_s0 = inlined_call_operand.hbm [shape: f32[64,512], index: 0, kind: input, shape index: {}]   ;;  %s2290_s1 = inlined_call_operand.hbm [shape: f32[64,512], index: 1, kind: output, shape index: {}]  }
   0x1   :  { %8 = vsyncpa [#allocation3 + $0x1], 0 }
   0x2   :  { %9 = vsyncpa [#allocation4], 0 }
   0x3   :  { %11 = vsyncpa [#allocation4 + $0x1], 0  ;;  %s1406_s6 = smov 0   ;;  %s1408_s7 = smov 0  }
   0x4   :  { %s1410_s8 = smov 0   ;;  %s1412_s9 = smov 0  }
   0x5 LB: > { %s1427_s10 = sadd.s32 4294967295, %s1382_s9   ;;  %s1106_s11 = sadd.s32 4294967294, %s1382_s9   ;;  %s1382_s9 = sphi %s1412_s9, %s2316_s9   ;;  %s1378_s8 = sphi %s1410_s8, %s2315_s8   ;;  %s1374_s7 = sphi %s1408_s7, %s2314_s7   ;;  %s1370_s6 = sphi %s1406_s6, %s2313_s6  }
   0x6   : > { %s1431_s12 = sadd.s32 1, %s1382_s9   ;;  %s24_s13 = sadd.s32 1, %s1378_s8 }
   0x7   : > { %s21_s14 = ssub.s32 %s1382_s9, %s1431_s12  ;;  %p31_p0 = scmp.ne.s32.totalorder %s1378_s8, %s1374_s7 }
   0x8   : > { %p22_p1 = scmp.eq.s32.totalorder %s21_s14, 0  ;;  %p32_p2 = scmp.eq.s32.totalorder %s1382_s9, 0 }
   0x9   : > { %p37_p3 = scmp.ne.s32.totalorder %s1374_s7, %s1370_s6  ;;  %p38_p4 = scmp.eq.s32.totalorder %s1427_s10, 0 }
   0xa   : > { %s1443_s15 = scalar_select %p22_p1, %s1378_s8, %s24_s13  }
   0xb   : > { %p1445_p5 = por %p32_p2, %p31_p0  ;;  %p1449_p6 = por %p38_p4, %p37_p3 }
   0xc   : > { %p61_p7 = scmp.eq.s32.totalorder %s1427_s10, 3  ;;  %p67_p8 = scmp.eq.s32.totalorder %s1106_s11, 3 }
   0xd   : > { %p1202_p9 = scmp.lt.s32.totalorder %s1382_s9, 4  ;;  %s87_s20 = sand.u32 1, %s1378_s8  }
   0xe   : > { %p1455_p10 = por %p61_p7, %p31_p0  ;;  %p1459_p11 = por %p67_p8, %p37_p3 }
   0xf   : > { %s1155_s21 = sshll.u32 %s1382_s9, 10  ;;  %s1109_s22 = sshll.u32 %s87_s20, 6 }
  0x10   : > { %s2294_s18 = scalar_select %p1455_p10, 1, 0 }
  0x11   : > { %s2295_s19 = scalar_select %p1459_p11, 1, 0 }
  0x12   : > { %s1468_s25 = scalar_lea.hbm %s2289_s0, %s1155_s21  ;;  %s91_s26 = scalar_lea.vmem [#allocation2], %s1109_s22 }
  0x13   : > { %s99_s27 = sshll.u32 %s91_s26, 4  ;;  %p1472_p12 = pnand %p1202_p9, %p1445_p5  ;;  %s1476_s27 = int_to_ptr.vmem [resolvable:$true] %s99_s27 }
  0x14   : > { %s1478_s29 = scalar_lea.sflag [#allocation3], %s87_s20  ;;  %s1286_s30 = scalar_lea.hbm %s1468_s25, 1024 }
  0x15   : > { %p1287_p13 = scmp.ne.s32.totalorder %s1468_s25, %s1286_s30  ;;  %p1288_p0 = pneg %p1472_p12 }
  0x16   : > { %s1291_s4 = scalar_lea.hbm %s2289_s0, 4096  ;;  %p1292_p3 = scmp.lt.u32.totalorder %s1468_s25, %s2289_s0 }
  0x17   : > { %p1289_p1 = pnand %p1288_p0, %p1287_p13  ;;  %p1293_p4 = scmp.lt.u32.totalorder %s1291_s4, %s1286_s30 }
  0x18   : > { %p1295_p7 = scmp.lt.u32.totalorder %s1286_s30, %s1468_s25 }
  0x19   : > { %p1290_p2 = pneg %p1289_p1  ;;  %p1294_p5 = por %p1293_p4, %p1292_p3 }
  0x1b   : > { %p1296_p8 = por %p1295_p7, %p1294_p5 }
  0x1d   : > { %p1297_p9 = pnand %p1296_p8, %p1290_p2 }
  0x1f   : > { %1300 = shalt.err (!%p1297_p9)
}
  0x20   : > { %s1301_s13 = scalar_lea.vmem %s1476_s27, 1024  ;;  %s1384_s14 = smov [#allocation2]  }
  0x21   : > { %p1302_p13 = scmp.ne.s32.totalorder %s1476_s27, %s1301_s13  ;;  %s1306_s16 = sshll.u32 %s1384_s14, 4  ;;  %s1307_s16 = int_to_ptr.vmem [resolvable:$false] %s1306_s16 }
  0x22   : > { %s1308_s20 = scalar_lea.vmem %s1307_s16, 2048  ;;  %p1309_p10 = scmp.lt.s32.totalorder %s1476_s27, %s1307_s16 }
  0x23   : > { %p1304_p1 = pnand %p1302_p13, %p1288_p0  ;;  %p1310_p3 = scmp.lt.s32.totalorder %s1308_s20, %s1301_s13 }
  0x25   : > { %p1305_p11 = pneg %p1304_p1  ;;  %p1311_p4 = por %p1310_p3, %p1309_p10 }
  0x27   : > { %p1312_p5 = pnand %p1311_p4, %p1305_p11 }
  0x29   : > { %1315 = shalt.err (!%p1312_p5)
}
  0x2a   : > { %s1385_s21 = smov 512   ;;  %s1386_s22 = smov 32  }
  0x2b   : > { %1197 = dma.hbm_to_vmem [thread:$0]  (!%p1472_p12), %s1468_s25, 1024, %s1476_s27, %s1478_s29, %s1385_s21, %s1385_s21, %s1386_s22  }
  0x2c   : > { %p1113_p0 = scmp.ge.s32.totalorder %s1382_s9, 1  ;;  %p107_p2 = scmp.lt.s32.totalorder %s1382_s9, 5 }
  0x2e   : > { %p108_p7 = pnand %p1113_p0, %p107_p2 }
  0x2f   : > { %s1509_s23 = sand.u32 (!%p108_p7), 1, %s1374_s7  }
  0x30   : > { %111 = sbr.rel (%p108_p7) target bundleno = 317 (0x13d), region = 24  ;;  %s1114_s24 = sshll.u32 (!%p108_p7), %s1509_s23, 6 }
  0x31   : > { %s114_s26 = scalar_lea.sflag (!%p108_p7), [#allocation3], %s1509_s23  ;;  %s1515_s30 = scalar_lea.vmem (!%p108_p7), [#allocation2], %s1114_s24 }
  0x37   : > { %1361 = dma.done.wait (%p1449_p6), %s114_s26, 1024  }
  0x38   : > { %1363 = vsyncadd (%p1449_p6), %s114_s26, 4294966272  ;;  %v138_v0 = vld [vmem:[%s1515_s30] sm:$0xff]  ;;  %v139_v1 = vld [vmem:[%s1515_s30 + $0x8] sm:$0xff]  ;;  %v1387_v33 = vmov 683565275   ;;  %s2190_s17 = scalar_lea.vmem [#allocation5], %s1114_s24 }
  0x39   : > { %v140_v2 = vld [vmem:[%s1515_s30 + $0x10] sm:$0xff]  ;;  %v1524_v3 = vmul.f32 0.62831855, %v138_v0  ;;  %v1526_v4 = vmul.f32 0.62831855, %v139_v1  ;;  %s1157_s25 = sshll.u32 %s1427_s10, 10 }
  0x3a   : > { %v1528_v5 = vmul.f32 0.62831855, %v140_v2  ;;  %v1388_v35 = vmov 2475754826   ;;  %v1389_v37 = vmov 2131351028   ;;  %s2243_s2 = scalar_lea.hbm %s2290_s1, %s1157_s25 }
  0x3b   : > { %v154_v6 = vand.u32 2147483647, %v1524_v3  ;;  %v157_v7 = vand.u32 2139095040, %v1524_v3  ;;  %v257_v8 = vand.u32 2147483647, %v1526_v4  ;;  %v260_v9 = vand.u32 2139095040, %v1526_v4 }
  0x3c   : > { %v363_v11 = vand.u32 2139095040, %v1528_v5  ;;  %v1390_v39 = vmov 2102212464   ;;  %v1391_v41 = vmov 920167782   ;;  %s1033_s27 = sshll.u32 %s2190_s17, 4  ;;  %s2245_s27 = int_to_ptr.vmem [resolvable:$true] %s1033_s27 }
  0x3d   : > { %v158_v10 = vshrl.u32 %v157_v7, 23  ;;  %v161_v12 = vand.u32 8388607, %v154_v6  ;;  %v261_v13 = vshrl.u32 %v260_v9, 23  ;;  %v264_v14 = vand.u32 8388607, %v257_v8 }
  0x3e   : > { %v364_v16 = vshrl.u32 %v363_v11, 23  ;;  %v1392_v49 = vmov 1326507024   ;;  %s1019_s3 = scalar_lea.sflag [#allocation4], %s1509_s23  ;;  %s1316_s4 = scalar_lea.vmem %s2245_s27, 1024 }
  0x3f   : > { %v1116_v15 = vadd.s32 4294967169, %v158_v10  ;;  %v1120_v17 = vadd.s32 4294967169, %v261_v13  ;;  %v162_v20 = vor.u32 8388608, %v161_v12  ;;  %v265_v21 = vor.u32 8388608, %v264_v14  ;;  %p1317_p6 = scmp.ne.s32.totalorder %s2245_s27, %s1316_s4  ;;  %p2311_p10 = scmp.ne.s32.totalorder %s2294_s18, 0 }
  0x40   : > { %v1124_v19 = vadd.s32 4294967169, %v364_v16  ;;  %s1393_s10 = smov [#allocation5]  }
  0x41   : > { %v164_v18 = vadd.s32 1, %v1116_v15  ;;  %v267_v22 = vadd.s32 1, %v1120_v17  ;;  %v1539_v28 = vshll.u32 %v162_v20, 8  ;;  %v1543_v31 = vshll.u32 %v265_v21, 8  ;;  %p1318_p11 = pnand %p1317_p6, %p2311_p10  ;;  %s1320_s5 = sshll.u32 %s1393_s10, 4  ;;  %s1321_s5 = int_to_ptr.vmem [resolvable:$false] %s1320_s5 }
  0x42   : > { %v370_v23 = vadd.s32 1, %v1124_v19  ;;  %s1322_s11 = scalar_lea.vmem %s1321_s5, 2048  ;;  %p1323_p8 = scmp.lt.s32.totalorder %s2245_s27, %s1321_s5 }
  0x43   : > { %vm165_vm0 = vcmp.gt.s32.totalorder %v164_v18, 0  ;;  %vm268_vm1 = vcmp.gt.s32.totalorder %v267_v22, 0  ;;  %p1319_p12 = pneg %p1318_p11  ;;  %p1324_p9 = scmp.lt.s32.totalorder %s1322_s11, %s1316_s4 }
  0x44   : > { %v166_v24 = vsel %vm165_vm0, %v164_v18, 0  ;;  %v269_v27 = vsel %vm268_vm1, %v267_v22, 0  ;;  %vm371_vm2 = vcmp.gt.s32.totalorder %v370_v23, 0 }
  0x45   : > { %v167_v25 = vshrl.u32 %v166_v24, 5  ;;  %v168_v26 = vand.u32 31, %v166_v24  ;;  %v1541_v29 = vshrl.u32 %v269_v27, 5  ;;  %v271_v30 = vand.u32 31, %v269_v27  ;;  %p1325_p13 = por %p1324_p9, %p1323_p8 }
  0x46   : > { %v1551_v43 = vsel %vm371_vm2, %v370_v23, 0 }
  0x47   : > { %v169_v32 = vsub.s32 32, %v168_v26  ;;  %v171_v34 = vshll.u32 %v1387_v33, %v168_v26  ;;  %v174_v36 = vshll.u32 %v1388_v35, %v168_v26  ;;  %v177_v38 = vshll.u32 %v1389_v37, %v168_v26  ;;  %p1326_p1 = pnand %p1325_p13, %p1319_p12 }
  0x48   : > { %v180_v40 = vshll.u32 %v1390_v39, %v168_v26  ;;  %v183_v42 = vshll.u32 %v1391_v41, %v168_v26  ;;  %vm186_vm3 = vcmp.lt.s32.totalorder %v167_v25, 1  ;;  %vm187_vm4 = vcmp.lt.s32.totalorder %v167_v25, 2 }
  0x49   : > { %v170_v44 = vshrl.u32 %v1387_v33, %v169_v32  ;;  %v172_v45 = vshrl.u32 %v1388_v35, %v169_v32  ;;  %v175_v46 = vshrl.u32 %v1389_v37, %v169_v32  ;;  %v178_v47 = vshrl.u32 %v1390_v39, %v169_v32 }
  0x4a   : > { %v181_v48 = vshrl.u32 %v1391_v41, %v169_v32  ;;  %v184_v50 = vshrl.u32 %v1392_v49, %v169_v32  ;;  %vm189_vm5 = vcmp.lt.s32.totalorder %v167_v25, 4  ;;  %v272_v54 = vsub.s32 32, %v271_v30 }
  0x4b   : > { %v173_v51 = vor.u32 %v172_v45, %v171_v34  ;;  %v176_v52 = vor.u32 %v175_v46, %v174_v36  ;;  %v179_v53 = vor.u32 %v178_v47, %v177_v38  ;;  %vm188_vm6 = vcmp.lt.s32.totalorder %v167_v25, 3 }
  0x4c   : > { %v182_v55 = vor.u32 %v181_v48, %v180_v40  ;;  %v185_v56 = vor.u32 %v184_v50, %v183_v42  ;;  %v274_v57 = vshll.u32 %v1387_v33, %v271_v30  ;;  %v277_v1 = vshll.u32 %v1388_v35, %v271_v30 }
  0x4d   : > { %v190_v58 = vsel %vm186_vm3, %v170_v44, %v173_v51  ;;  %v191_v59 = vsel %vm189_vm5, %v179_v53, 2102212464  ;;  %v194_v60 = vsel %vm186_vm3, %v173_v51, %v176_v52  ;;  %v198_v61 = vsel %vm186_vm3, %v176_v52, %v179_v53 }
  0x4e   : > { %v192_v62 = vsel %vm188_vm6, %v176_v52, %v191_v59  ;;  %v195_v63 = vsel %vm189_vm5, %v182_v55, 920167782  ;;  %v199_v0 = vsel %vm189_vm5, %v185_v56, 1326507024  ;;  %v273_v9 = vshrl.u32 %v1387_v33, %v272_v54 }
  0x4f   : > { %v196_v2 = vsel %vm188_vm6, %v179_v53, %v195_v63  ;;  %v200_v7 = vsel %vm188_vm6, %v182_v55, %v199_v0  ;;  %v275_v10 = vshrl.u32 %v1388_v35, %v272_v54  ;;  %v193_v11 = vsel %vm187_vm4, %v190_v58, %v192_v62  ;;  %v141_v55 = vld [vmem:[%s1515_s30 + $0x18] sm:$0xff] }
  0x50   : > { %v197_v12 = vsel %vm187_vm4, %v194_v60, %v196_v2  ;;  %v201_v13 = vsel %vm187_vm4, %v198_v61, %v200_v7  ;;  %v278_v14 = vshrl.u32 %v1389_v37, %v272_v54  ;;  %v280_v21 = vshll.u32 %v1389_v37, %v271_v30 }
  0x51   : > { %v1571_v15 = vmul.u32.u64.low %v1539_v28, %v201_v13  ;;  %v1572_v16 = vmul.u32.u64.high %v1539_v28, %v201_v13, %v1571_v15  ;;  %v1575_v17 = vmul.u32.u64.low %v1539_v28, %v197_v12  ;;  %v1576_v18 = vmul.u32.u64.high %v1539_v28, %v197_v12, %v1575_v17 }
  0x52   : > { %v276_v19 = vor.u32 %v275_v10, %v274_v57  ;;  %v279_v20 = vor.u32 %v278_v14, %v277_v1  ;;  %v281_v22 = vshrl.u32 %v1390_v39, %v272_v54  ;;  %v283_v23 = vshll.u32 %v1390_v39, %v271_v30 }
  0x53   : > { %v284_v24 = vshrl.u32 %v1391_v41, %v272_v54  ;;  %v286_v25 = vshll.u32 %v1391_v41, %v271_v30  ;;  %v287_v26 = vshrl.u32 %v1392_v49, %v272_v54  ;;  %v209_v27 = vmul.u32 %v1539_v28, %v193_v11 }
  0x54   : > { %v282_v32 = vor.u32 %v281_v22, %v280_v21  ;;  %vm289_vm7 = vcmp.lt.s32.totalorder %v1541_v29, 1  ;;  %vm290_vm8 = vcmp.lt.s32.totalorder %v1541_v29, 2  ;;  %vm211_vm9 = vc.u32 %v1572_v16, %v1575_v17 }
  0x55   : > { %v212_v34 = vadd.s32 1, %v1576_v18  ;;  %v285_v36 = vor.u32 %v284_v24, %v283_v23  ;;  %vm291_vm10 = vcmp.lt.s32.totalorder %v1541_v29, 3  ;;  %v288_v38 = vor.u32 %v287_v26, %v286_v25 }
  0x56   : > { %vm292_vm11 = vcmp.lt.s32.totalorder %v1541_v29, 4  ;;  %v293_v30 = vsel %vm289_vm7, %v273_v9, %v276_v19  ;;  %v297_v40 = vsel %vm289_vm7, %v276_v19, %v279_v20  ;;  %v301_v45 = vsel %vm289_vm7, %v279_v20, %v282_v32 }
  0x57   : > { %v213_v28 = vsel %vm211_vm9, %v212_v34, %v1576_v18  ;;  %v294_v42 = vsel %vm292_vm11, %v282_v32, 2102212464  ;;  %v298_v44 = vsel %vm292_vm11, %v285_v36, 920167782  ;;  %v302_v50 = vsel %vm292_vm11, %v288_v38, 1326507024 }
  0x58   : > { %v214_v46 = vadd.s32 %v213_v28, %v209_v27  ;;  %v295_v47 = vsel %vm291_vm10, %v279_v20, %v294_v42  ;;  %v299_v48 = vsel %vm291_vm10, %v282_v32, %v298_v44  ;;  %v303_v53 = vsel %vm291_vm10, %v285_v36, %v302_v50 }
  0x59   : > { %v296_v51 = vsel %vm290_vm8, %v293_v30, %v295_v47  ;;  %v300_v52 = vsel %vm290_vm8, %v297_v40, %v299_v48  ;;  %v360_v54 = vand.u32 2147483647, %v1528_v5  ;;  %v304_v57 = vsel %vm290_vm8, %v301_v45, %v303_v53 }
  0x5a   : > { %v215_v56 = vadd.s32 536870912, %v214_v46  ;;  %v1603_v58 = vmul.u32.u64.low %v1543_v31, %v300_v52  ;;  %v1604_v59 = vmul.u32.u64.high %v1543_v31, %v300_v52, %v1603_v58  ;;  %v374_v62 = vand.u32 31, %v1551_v43 }
  0x5b   : > { %v1608_v60 = vmul.u32.u64.low %v1543_v31, %v304_v57  ;;  %v1609_v61 = vmul.u32.u64.high %v1543_v31, %v304_v57, %v1608_v60  ;;  %v1614_v0 = vmul.f32 0.62831855, %v141_v55  ;;  %v312_v1 = vmul.u32 %v1543_v31, %v296_v51 }
  0x5c   : > { %v1612_v63 = vshrl.u32 %v215_v56, 30  ;;  %v375_v2 = vsub.s32 32, %v374_v62  ;;  %v315_v7 = vadd.s32 1, %v1604_v59  ;;  %v367_v9 = vand.u32 8388607, %v360_v54 }
  0x5d   : > { %v373_v10 = vshrl.u32 %v1551_v43, 5  ;;  %vm314_vm12 = vc.u32 %v1609_v61, %v1603_v58  ;;  %v377_v11 = vshll.u32 %v1387_v33, %v374_v62  ;;  %v380_v12 = vshll.u32 %v1388_v35, %v374_v62 }
  0x5e   : > { %v217_v29 = vshll.u32 %v1612_v63, 30  ;;  %v383_v13 = vshll.u32 %v1389_v37, %v374_v62  ;;  %v316_v14 = vsel %vm314_vm12, %v315_v7, %v1604_v59  ;;  %v378_v15 = vshrl.u32 %v1388_v35, %v375_v2 }
  0x5f   : > { %v381_v18 = vshrl.u32 %v1389_v37, %v375_v2  ;;  %v317_v19 = vadd.s32 %v316_v14, %v312_v1  ;;  %v384_v43 = vshrl.u32 %v1390_v39, %v375_v2  ;;  %v386_v20 = vshll.u32 %v1390_v39, %v374_v62 }
  0x60   : > { %v1627_v31 = vsub.s32 %v214_v46, %v217_v29  ;;  %v368_v22 = vor.u32 8388608, %v367_v9  ;;  %v387_v23 = vshrl.u32 %v1391_v41, %v375_v2  ;;  %v466_v24 = vand.u32 2139095040, %v1614_v0 }
  0x61   : > { %v318_v25 = vadd.s32 536870912, %v317_v19  ;;  %v389_v26 = vshll.u32 %v1391_v41, %v374_v62  ;;  %v390_v27 = vshrl.u32 %v1392_v49, %v375_v2  ;;  %vm392_vm13 = vcmp.lt.s32.totalorder %v373_v10, 1 }
  0x62   : > { %v220_v21 = vsub.s32 0, %v1627_v31  ;;  %v379_v34 = vor.u32 %v378_v15, %v377_v11  ;;  %v382_v36 = vor.u32 %v381_v18, %v380_v12  ;;  %v385_v38 = vor.u32 %v384_v43, %v383_v13 }
  0x63   : > { %v1640_v30 = vshrl.u32 %v318_v25, 30  ;;  %v388_v40 = vor.u32 %v387_v23, %v386_v20  ;;  %v391_v28 = vor.u32 %v390_v27, %v389_v26  ;;  %vm395_vm14 = vcmp.lt.s32.totalorder %v373_v10, 4  ;;  %v144_v26 = vld [vmem:[%s1515_s30 + $0x30] sm:$0xff] }
  0x64   : > { %v1117_v32 = vmin.u32 %v220_v21, %v1627_v31  ;;  %v376_v44 = vshrl.u32 %v1387_v33, %v375_v2  ;;  %vm394_vm15 = vcmp.lt.s32.totalorder %v373_v10, 3  ;;  %v467_v45 = vshrl.u32 %v466_v24, 23  ;;  %v142_v21 = vld [vmem:[%s1515_s30 + $0x20] sm:$0xff] }
  0x65   : > { %v320_v46 = vshll.u32 %v1640_v30, 30  ;;  %v401_v47 = vsel %vm395_vm14, %v388_v40, 920167782  ;;  %v408_v48 = vshll.u32 %v368_v22, 8  ;;  %vm393_vm0 = vcmp.lt.s32.totalorder %v373_v10, 2  ;;  %v143_v10 = vld [vmem:[%s1515_s30 + $0x28] sm:$0xff] }
  0x66   : > { %v222_v42 = vclz %v1117_v32  ;;  %v397_v51 = vsel %vm395_vm14, %v385_v38, 2102212464  ;;  %v404_v52 = vsel %vm392_vm13, %v382_v36, %v385_v38  ;;  %v400_v55 = vsel %vm392_vm13, %v379_v34, %v382_v36 }
  0x67   : > { %v1645_v53 = vsub.s32 %v317_v19, %v320_v46  ;;  %v402_v56 = vsel %vm394_vm15, %v385_v38, %v401_v47  ;;  %v405_v57 = vsel %vm395_vm14, %v391_v28, 1326507024  ;;  %v396_v59 = vsel %vm392_vm13, %v376_v44, %v379_v34 }
  0x68   : > { %v1118_v50 = vadd.s32 4294967294, %v222_v42  ;;  %v406_v60 = vsel %vm394_vm15, %v388_v40, %v405_v57  ;;  %v1128_v62 = vadd.s32 4294967169, %v467_v45  ;;  %v398_v29 = vsel %vm394_vm15, %v382_v36, %v397_v51  ;;  %v145_v42 = vld [vmem:[%s1515_s30 + $0x38] sm:$0xff] }
  0x69   : > { %v323_v2 = vsub.s32 0, %v1645_v53  ;;  %v407_v7 = vsel %vm393_vm0, %v404_v52, %v406_v60  ;;  %v403_v9 = vsel %vm393_vm0, %v400_v55, %v402_v56  ;;  %v399_v13 = vsel %vm393_vm0, %v396_v59, %v398_v29 }
  0x6a   : > { %vm1119_vm1 = vcmp.lt.s32.totalorder %v1118_v50, 0  ;;  %v1657_v14 = vmul.u32.u64.low %v408_v48, %v407_v7  ;;  %v1658_v15 = vmul.u32.u64.high %v408_v48, %v407_v7, %v1657_v14  ;;  %v473_v20 = vadd.s32 1, %v1128_v62 }
  0x6b   : > { %v225_v1 = vsel %vm1119_vm1, 0, %v1118_v50  ;;  %v1121_v11 = vmin.u32 %v323_v2, %v1645_v53  ;;  %v1660_v19 = vmul.u32.u64.low %v408_v48, %v403_v9  ;;  %v1661_v43 = vmul.u32.u64.high %v408_v48, %v403_v9, %v1660_v19 }
  0x6c   : > { %v230_v12 = vsub.s32 4294967266, %v225_v1  ;;  %vm474_vm2 = vcmp.gt.s32.totalorder %v473_v20, 0  ;;  %v210_v23 = vadd.s32 %v1575_v17, %v1572_v16  ;;  %v226_v24 = vsub.s32 32, %v225_v1 }
  0x6d   : > { %v325_v18 = vclz %v1121_v11  ;;  %v415_v25 = vmul.u32 %v408_v48, %v399_v13  ;;  %vm417_vm3 = vc.u32 %v1658_v15, %v1660_v19  ;;  %v418_v32 = vadd.s32 1, %v1661_v43 }
  0x6e   : > { %v231_v27 = vadd.s32 127, %v230_v12  ;;  %v475_v34 = vsel %vm474_vm2, %v473_v20, 0  ;;  %v1672_v36 = vmul.f32 0.62831855, %v142_v21  ;;  %v463_v40 = vand.u32 2147483647, %v1614_v0 }
  0x6f   : > { %v1122_v22 = vadd.s32 4294967294, %v325_v18  ;;  %v477_v28 = vand.u32 31, %v475_v34  ;;  %v313_v16 = vadd.s32 %v1603_v58, %v1609_v61  ;;  %v419_v45 = vsel %vm417_vm3, %v418_v32, %v1661_v43 }
  0x70   : > { %v1679_v46 = vmul.f32 0.62831855, %v143_v10  ;;  %v1681_v47 = vmul.f32 0.62831855, %v144_v26  ;;  %v420_v48 = vadd.s32 %v419_v45, %v415_v25  ;;  %v227_v51 = vshll.u32 %v1627_v31, %v225_v1 }
  0x71   : > { %vm1123_vm4 = vcmp.lt.s32.totalorder %v1122_v22, 0  ;;  %v478_v50 = vsub.s32 32, %v477_v28  ;;  %v228_v52 = vshrl.u32 %v210_v23, %v226_v24  ;;  %v232_v55 = vshll.u32 %v231_v27, 23 }
  0x72   : > { %v328_v38 = vsel %vm1123_vm4, 0, %v1122_v22  ;;  %v1684_v57 = vmul.f32 0.62831855, %v145_v42  ;;  %v240_v59 = vsub.s32 4, %v1612_v63  ;;  %v421_v58 = vadd.s32 536870912, %v420_v48 }
  0x73   : > { %v329_v17 = vsub.s32 32, %v328_v38  ;;  %v333_v44 = vsub.s32 4294967266, %v328_v38  ;;  %v470_v61 = vand.u32 8388607, %v463_v40  ;;  %v330_v60 = vshll.u32 %v1645_v53, %v328_v38 }
  0x74   : > { %v480_v2 = vshll.u32 %v1387_v33, %v477_v28  ;;  %v481_v29 = vshrl.u32 %v1388_v35, %v478_v50  ;;  %v1692_v31 = vshrl.u32 %v421_v58, 30  ;;  %v483_v1 = vshll.u32 %v1388_v35, %v477_v28 }
  0x75   : > { %v334_v56 = vadd.s32 127, %v333_v44  ;;  %v331_v62 = vshrl.u32 %v313_v16, %v329_v17  ;;  %v484_v9 = vshrl.u32 %v1389_v37, %v478_v50  ;;  %v229_v11 = vor.u32 %v228_v52, %v227_v51 }
  0x76   : > { %v233_v12 = vor.u32 4788187, %v232_v55  ;;  %v476_v13 = vshrl.u32 %v475_v34, 5  ;;  %v489_v14 = vshll.u32 %v1390_v39, %v477_v28  ;;  %v423_v18 = vshll.u32 %v1692_v31, 30 }
  0x77   : > { %v335_v7 = vshll.u32 %v334_v56, 23  ;;  %v471_v53 = vor.u32 8388608, %v470_v61  ;;  %v486_v43 = vshll.u32 %v1389_v37, %v477_v28  ;;  %v487_v20 = vshrl.u32 %v1390_v39, %v478_v50 }
  0x78   : > { %v332_v21 = vor.u32 %v331_v62, %v330_v60  ;;  %v482_v22 = vor.u32 %v481_v29, %v480_v2  ;;  %v490_v23 = vshrl.u32 %v1391_v41, %v478_v50  ;;  %v492_v24 = vshll.u32 %v1391_v41, %v477_v28 }
  0x79   : > { %v336_v25 = vor.u32 4788187, %v335_v7  ;;  %v1702_v10 = vsub.s32 %v420_v48, %v423_v18  ;;  %v485_v26 = vor.u32 %v484_v9, %v483_v1  ;;  %v493_v27 = vshrl.u32 %v1392_v49, %v478_v50 }
  0x7a   : > { %v234_v32 = vand.u32 2147483647, %v233_v12  ;;  %v236_v34 = vcvt.s32.f32 %v229_v11  ;;  %v491_v38 = vor.u32 %v490_v23, %v489_v14  ;;  %vm495_vm5 = vcmp.lt.s32.totalorder %v476_v13, 1 }
  0x7b   : > { %vm156_vm6 = vcmp.lt.s32.totalorder %v1524_v3, 0  ;;  %vm259_vm7 = vcmp.lt.s32.totalorder %v1526_v4, 0  ;;  %v343_v42 = vsub.s32 4, %v1640_v30  ;;  %v426_v16 = vsub.s32 0, %v1702_v10 }
  0x7c   : > { %v479_v28 = vshrl.u32 %v1387_v33, %v478_v50  ;;  %v488_v17 = vor.u32 %v487_v20, %v486_v43  ;;  %v339_v44 = vcvt.s32.f32 %v332_v21  ;;  %v494_v45 = vor.u32 %v493_v27, %v492_v24 }
  0x7d   : > { %vm497_vm8 = vcmp.lt.s32.totalorder %v476_v13, 3  ;;  %vm498_vm9 = vcmp.lt.s32.totalorder %v476_v13, 4  ;;  %v337_v48 = vand.u32 2147483647, %v336_v25  ;;  %v1125_v51 = vmin.u32 %v426_v16, %v1702_v10 }
  0x7e   : > { %vm496_vm10 = vcmp.lt.s32.totalorder %v476_v13, 2  ;;  %v503_v52 = vsel %vm495_vm5, %v482_v22, %v485_v26  ;;  %v237_v55 = vmul.f32 %v236_v34, %v234_v32  ;;  %v500_v56 = vsel %vm498_vm9, %v488_v17, 2102212464 }
  0x7f   : > { %v504_v58 = vsel %vm498_vm9, %v491_v38, 920167782  ;;  %v511_v61 = vshll.u32 %v471_v53, 8  ;;  %vm1716_vm11 = vcmp.le.f32.partialorder %v154_v6, 0.7853982  ;;  %v428_v60 = vclz %v1125_v51 }
  0x80   : > { %v505_v62 = vsel %vm497_vm8, %v488_v17, %v504_v58  ;;  %v507_v2 = vsel %vm495_vm5, %v485_v26, %v488_v17  ;;  %v569_v29 = vand.u32 2139095040, %v1672_v36  ;;  %v499_v7 = vsel %vm495_vm5, %v479_v28, %v482_v22 }
  0x81   : > { %v501_v1 = vsel %vm497_vm8, %v485_v26, %v500_v56  ;;  %v506_v9 = vsel %vm496_vm10, %v503_v52, %v505_v62  ;;  %v508_v11 = vsel %vm498_vm9, %v494_v45, 1326507024  ;;  %v340_v12 = vmul.f32 %v339_v44, %v337_v48 }
  0x82   : > { %v416_v6 = vadd.s32 %v1660_v19, %v1658_v15  ;;  %v1126_v14 = vadd.s32 4294967294, %v428_v60  ;;  %v509_v18 = vsel %vm497_vm8, %v491_v38, %v508_v11  ;;  %v238_v53 = vxor.u32 2147483648, %v237_v55 }
  0x83   : > { %v510_v43 = vsel %vm496_vm10, %v507_v2, %v509_v18  ;;  %v1731_v20 = vmul.u32.u64.low %v511_v61, %v506_v9  ;;  %v1732_v21 = vmul.u32.u64.high %v511_v61, %v506_v9, %v1731_v20  ;;  %v502_v22 = vsel %vm496_vm10, %v499_v7, %v501_v1 }
  0x84   : > { %vm1127_vm12 = vcmp.lt.s32.totalorder %v1126_v14, 0  ;;  %v1736_v23 = vmul.u32.u64.low %v511_v61, %v510_v43  ;;  %v1737_v24 = vmul.u32.u64.high %v511_v61, %v510_v43, %v1736_v23  ;;  %v241_v15 = vsel %vm156_vm6, %v240_v59, %v1612_v63 }
  0x85   : > { %v344_v19 = vsel %vm259_vm7, %v343_v42, %v1640_v30  ;;  %v431_v25 = vsel %vm1127_vm12, 0, %v1126_v14  ;;  %v570_v26 = vshrl.u32 %v569_v29, 23  ;;  %v341_v27 = vxor.u32 2147483648, %v340_v12 }
  0x86   : > { %v432_v32 = vsub.s32 32, %v431_v25  ;;  %v433_v13 = vshll.u32 %v1702_v10, %v431_v25  ;;  %v436_v34 = vsub.s32 4294967266, %v431_v25  ;;  %vm1750_vm13 = vcmp.le.f32.partialorder %v257_v8, 0.7853982 }
  0x87   : > { %v518_v16 = vmul.u32 %v511_v61, %v502_v22  ;;  %v521_v63 = vadd.s32 1, %v1732_v21  ;;  %v1132_v59 = vadd.s32 4294967169, %v570_v26  ;;  %v239_v30 = vsel %vm156_vm6, %v238_v53, %v237_v55 }
  0x88   : > { %v434_v42 = vshrl.u32 %v416_v6, %v432_v32  ;;  %v437_v28 = vadd.s32 127, %v436_v34  ;;  %v566_v17 = vand.u32 2147483647, %v1672_v36  ;;  %v243_v10 = vsel %vm1716_vm11, 0, %v241_v15 }
  0x89   : > { %v346_v8 = vsel %vm1750_vm13, 0, %v344_v19  ;;  %vm520_vm14 = vc.u32 %v1737_v24, %v1731_v20  ;;  %v576_v44 = vadd.s32 1, %v1132_v59  ;;  %v342_v45 = vsel %vm259_vm7, %v341_v27, %v340_v12 }
  0x8a   : > { %v435_v48 = vor.u32 %v434_v42, %v433_v13  ;;  %v438_v51 = vshll.u32 %v437_v28, 23  ;;  %v522_v52 = vsel %vm520_vm14, %v521_v63, %v1732_v21  ;;  %v242_v55 = vsel %vm1716_vm11, %v1524_v3, %v239_v30 }
  0x8b   : > { %v446_v56 = vsub.s32 4, %v1692_v31  ;;  %v523_v58 = vadd.s32 %v522_v52, %v518_v16  ;;  %vm577_vm15 = vcmp.gt.s32.totalorder %v576_v44, 0  ;;  %v573_v62 = vand.u32 8388607, %v566_v17 }
  0x8c   : > { %v439_v61 = vor.u32 4788187, %v438_v51  ;;  %v442_v60 = vcvt.s32.f32 %v435_v48  ;;  %v578_v2 = vsel %vm577_vm15, %v576_v44, 0  ;;  %v345_v29 = vsel %vm1750_vm13, %v1526_v4, %v342_v45 }
  0x8d   : > { %vm362_vm0 = vcmp.lt.s32.totalorder %v1528_v5, 0  ;;  %v524_v7 = vadd.s32 536870912, %v523_v58  ;;  %v580_v1 = vand.u32 31, %v578_v2  ;;  %1246 = vcosq.f32 %v242_v55 }
  0x8e   : > { %v1777_v50 = vand.u32 3, %v243_v10  ;;  %vm1781_vm1 = vcmp.le.f32.partialorder %v360_v54, 0.7853982  ;;  %v440_v11 = vand.u32 2147483647, %v439_v61  ;;  %1248 = vsinq.f32 %v242_v55 }
  0x8f   : > { %v1785_v12 = vand.u32 3, %v346_v8  ;;  %v1787_v6 = vshrl.u32 %v524_v7, 30  ;;  %v581_v14 = vsub.s32 32, %v580_v1  ;;  %1250 = vcosq.f32 %v345_v29 }
  0x90   : > { %v443_v18 = vmul.f32 %v442_v60, %v440_v11  ;;  %v1792_v53 = vsel %vm362_vm0, %v446_v56, %v1692_v31  ;;  %v574_v43 = vor.u32 8388608, %v573_v62  ;;  %v583_v21 = vshll.u32 %v1387_v33, %v580_v1 }
  0x91   : > { %v526_v54 = vshll.u32 %v1787_v6, 30  ;;  %v586_v22 = vshll.u32 %v1388_v35, %v580_v1  ;;  %v589_v23 = vshll.u32 %v1389_v37, %v580_v1  ;;  %v584_v19 = vshrl.u32 %v1388_v35, %v581_v14 }
  0x92   : > { %v444_v15 = vxor.u32 2147483648, %v443_v18  ;;  %v587_v25 = vshrl.u32 %v1389_v37, %v581_v14  ;;  %v590_v26 = vshrl.u32 %v1390_v39, %v581_v14  ;;  %v592_v31 = vshll.u32 %v1390_v39, %v580_v1 }
  0x93   : > { %v1801_v27 = vsub.s32 %v523_v58, %v526_v54  ;;  %v593_v32 = vshrl.u32 %v1391_v41, %v581_v14  ;;  %v672_v13 = vand.u32 2139095040, %v1679_v46  ;;  %1252 = vsinq.f32 %v345_v29 }
  0x94   : > { %v449_v34 = vsel %vm1781_vm1, 0, %v1792_v53  ;;  %v579_v38 = vshrl.u32 %v578_v2, 5  ;;  %v582_v16 = vshrl.u32 %v1387_v33, %v581_v14  ;;  %v445_v63 = vsel %vm362_vm0, %v444_v15, %v443_v18 }
  0x95   : > { %v529_v59 = vsub.s32 0, %v1801_v27  ;;  %v585_v30 = vor.u32 %v584_v19, %v583_v21  ;;  %v588_v42 = vor.u32 %v587_v25, %v586_v22  ;;  %v591_v28 = vor.u32 %v590_v26, %v589_v23 }
  0x96   : > { %v594_v10 = vor.u32 %v593_v32, %v592_v31  ;;  %v595_v8 = vshll.u32 %v1391_v41, %v580_v1  ;;  %v596_v44 = vshrl.u32 %v1392_v49, %v581_v14  ;;  %v519_v45 = vadd.s32 %v1731_v20, %v1737_v24 }
  0x97   : > { %v1129_v48 = vmin.u32 %v529_v59, %v1801_v27  ;;  %v614_v51 = vshll.u32 %v574_v43, 8  ;;  %v673_v52 = vshrl.u32 %v672_v13, 23  ;;  %v1818_v55 = vpop.eup %1246  ;;  %v448_v56 = vsel %vm1781_vm1, %v1528_v5, %v445_v63 }
  0x98   : > { %v597_v58 = vor.u32 %v596_v44, %v595_v8  ;;  %vm598_vm2 = vcmp.lt.s32.totalorder %v579_v38, 1  ;;  %vm599_vm3 = vcmp.lt.s32.totalorder %v579_v38, 2  ;;  %v1823_v61 = vpop.eup %1248  ;;  %vm600_vm4 = vcmp.lt.s32.totalorder %v579_v38, 3 }
  0x99   : > { %v531_v60 = vclz %v1129_v48  ;;  %vm601_vm5 = vcmp.lt.s32.totalorder %v579_v38, 4  ;;  %v602_v62 = vsel %vm598_vm2, %v582_v16, %v585_v30  ;;  %v1251_v20 = vpop.eup %1250  ;;  %vm252_vm6 = vcmp.eq.s32.totalorder %v1777_v50, 2 }
  0x9a   : > { %v603_v24 = vsel %vm601_vm5, %v591_v28, 2102212464  ;;  %v606_v2 = vsel %vm598_vm2, %v585_v30, %v588_v42  ;;  %v607_v29 = vsel %vm601_vm5, %v594_v10, 920167782  ;;  %v610_v7 = vsel %vm598_vm2, %v588_v42, %v591_v28 }
  0x9b   : > { %vm249_vm7 = vcmp.eq.s32.totalorder %v1777_v50, 0  ;;  %vm355_vm8 = vcmp.eq.s32.totalorder %v1785_v12, 2  ;;  %vm465_vm9 = vcmp.lt.s32.totalorder %v1614_v0, 0  ;;  %v1130_v1 = vadd.s32 4294967294, %v531_v60 }
  0x9c   : > { %v604_v11 = vsel %vm600_vm4, %v588_v42, %v603_v24  ;;  %v608_v14 = vsel %vm600_vm4, %v591_v28, %v607_v29  ;;  %v611_v18 = vsel %vm601_vm5, %v597_v58, 1326507024  ;;  %vm352_vm10 = vcmp.eq.s32.totalorder %v1785_v12, 0 }
  0x9d   : > { %v605_v43 = vsel %vm599_vm3, %v602_v62, %v604_v11  ;;  %v609_v54 = vsel %vm599_vm3, %v606_v2, %v608_v14  ;;  %v612_v21 = vsel %vm600_vm4, %v594_v10, %v611_v18  ;;  %v1136_v22 = vadd.s32 4294967169, %v673_v52  ;;  %v1253_v25 = vpop.eup %1252 }
  0x9e   : > { %vm1131_vm11 = vcmp.lt.s32.totalorder %v1130_v1, 0  ;;  %v613_v23 = vsel %vm599_vm3, %v610_v7, %v612_v21  ;;  %v1836_v15 = vmul.u32.u64.low %v614_v51, %v609_v54  ;;  %v1837_v19 = vmul.u32.u64.high %v614_v51, %v609_v54, %v1836_v15 }
  0x9f   : > { %1254 = vcosq.f32 %v448_v56  ;;  %vm1842_vm12 = vcmp.le.f32.partialorder %v463_v40, 0.7853982  ;;  %v534_v31 = vsel %vm1131_vm11, 0, %v1130_v1  ;;  %v549_v59 = vsub.s32 4, %v1787_v6 }
  0xa0   : > { %v1846_v32 = vmul.u32.u64.low %v614_v51, %v613_v23  ;;  %v1847_v13 = vmul.u32.u64.high %v614_v51, %v613_v23, %v1846_v32  ;;  %1256 = vsinq.f32 %v448_v56  ;;  %v535_v16 = vsub.s32 32, %v534_v31 }
  0xa1   : > { %v536_v38 = vshll.u32 %v1801_v27, %v534_v31  ;;  %v539_v63 = vsub.s32 4294967266, %v534_v31  ;;  %v621_v30 = vmul.u32 %v614_v51, %v605_v43  ;;  %v669_v42 = vand.u32 2147483647, %v1679_v46 }
  0xa2   : > { %v679_v28 = vadd.s32 1, %v1136_v22  ;;  %v253_v40 = vxor.u32 2147483648, %v1818_v55  ;;  %v537_v10 = vshrl.u32 %v519_v45, %v535_v16  ;;  %v624_v44 = vadd.s32 1, %v1837_v19 }
  0xa3   : > { %v540_v8 = vadd.s32 127, %v539_v63  ;;  %v250_v48 = vxor.u32 2147483648, %v1823_v61  ;;  %v356_v52 = vxor.u32 2147483648, %v1251_v20  ;;  %v1859_v27 = vand.u32 3, %v449_v34 }
  0xa4   : > { %vm623_vm13 = vc.u32 %v1847_v13, %v1836_v15  ;;  %v353_v51 = vxor.u32 2147483648, %v1253_v25  ;;  %v538_v56 = vor.u32 %v537_v10, %v536_v38  ;;  %v1867_v60 = vsel %vm465_vm9, %v549_v59, %v1787_v6 }
  0xa5   : > { %v541_v58 = vshll.u32 %v540_v8, 23  ;;  %v625_v45 = vsel %vm623_vm13, %v624_v44, %v1837_v19  ;;  %v676_v9 = vand.u32 8388607, %v669_v42  ;;  %vm680_vm14 = vcmp.gt.s32.totalorder %v679_v28, 0 }
  0xa6   : > { %v626_v62 = vadd.s32 %v625_v45, %v621_v30  ;;  %v1874_v53 = vsel %vm252_vm6, %v253_v40, %v1823_v61  ;;  %v545_v24 = vcvt.s32.f32 %v538_v56  ;;  %v681_v2 = vsel %vm680_vm14, %v679_v28, 0 }
  0xa7   : > { %v542_v34 = vor.u32 4788187, %v541_v58  ;;  %v1879_v29 = vsel %vm249_vm7, %v1818_v55, %v250_v48  ;;  %v1883_v6 = vsel %vm355_vm8, %v356_v52, %v1253_v25  ;;  %v683_v1 = vand.u32 31, %v681_v2 }
  0xa8   : > { %v627_v7 = vadd.s32 536870912, %v626_v62  ;;  %v1887_v11 = vsel %vm352_vm10, %v1251_v20, %v353_v51  ;;  %v552_v14 = vsel %vm1842_vm12, 0, %v1867_v60  ;;  %v772_v18 = vand.u32 2147483647, %v1681_v47 }
  0xa9   : > { %v543_v61 = vand.u32 2147483647, %v542_v34  ;;  %v1893_v43 = vpop.eup %1254  ;;  %v677_v54 = vor.u32 8388608, %v676_v9  ;;  %v1897_v21 = vshrl.u32 %v681_v2, 5  ;;  %v684_v22 = vsub.s32 32, %v683_v1 }
  0xaa   : > { %v1895_v55 = vshrl.u32 %v627_v7, 30  ;;  %v1899_v23 = vpop.eup %1256  ;;  %vm458_vm15 = vcmp.eq.s32.totalorder %v1859_v27, 2  ;;  %v686_v19 = vshll.u32 %v1387_v33, %v683_v1  ;;  %v689_v25 = vshll.u32 %v1388_v35, %v683_v1 }
  0xab   : > { %v546_v20 = vmul.f32 %v545_v24, %v543_v61  ;;  %v692_v31 = vshll.u32 %v1389_v37, %v683_v1  ;;  %v687_v16 = vshrl.u32 %v1388_v35, %v684_v22  ;;  %v695_v38 = vshll.u32 %v1390_v39, %v683_v1 }
  0xac   : > { %v629_v32 = vshll.u32 %v1895_v55, 30  ;;  %v698_v63 = vshll.u32 %v1391_v41, %v683_v1  ;;  %v690_v30 = vshrl.u32 %v1389_v37, %v684_v22  ;;  %v693_v28 = vshrl.u32 %v1390_v39, %v684_v22 }
  0xad   : > { %v547_v59 = vxor.u32 2147483648, %v546_v20  ;;  %v696_v40 = vshrl.u32 %v1391_v41, %v684_v22  ;;  %vm455_vm0 = vcmp.eq.s32.totalorder %v1859_v27, 0  ;;  %v456_v10 = vxor.u32 2147483648, %v1899_v23 }
  0xae   : > { %v459_v8 = vxor.u32 2147483648, %v1893_v43  ;;  %v1915_v44 = vsub.s32 %v626_v62, %v629_v32  ;;  %v699_v48 = vshrl.u32 %v1392_v49, %v684_v22  ;;  %v622_v51 = vadd.s32 %v1836_v15, %v1847_v13 }
  0xaf   : > { %v548_v52 = vsel %vm465_vm9, %v547_v59, %v546_v20  ;;  %v685_v56 = vshrl.u32 %v1387_v33, %v684_v22  ;;  %v688_v58 = vor.u32 %v687_v16, %v686_v19  ;;  %vm248_vm1 = vcmp.lt.s32.totalorder %v1777_v50, 2 }
  0xb0   : > { %v551_v45 = vsel %vm1842_vm12, %v1614_v0, %v548_v52  ;;  %vm568_vm2 = vcmp.lt.s32.totalorder %v1672_v36, 0  ;;  %v632_v62 = vsub.s32 0, %v1915_v44  ;;  %v691_v9 = vor.u32 %v690_v30, %v689_v25 }
  0xb1   : > { %v697_v34 = vor.u32 %v696_v40, %v695_v38  ;;  %vm351_vm3 = vcmp.lt.s32.totalorder %v1785_v12, 2  ;;  %v694_v24 = vor.u32 %v693_v28, %v692_v31  ;;  %v700_v2 = vor.u32 %v699_v48, %v698_v63 }
  0xb2   : > { %vm701_vm4 = vcmp.lt.s32.totalorder %v1897_v21, 1  ;;  %v717_v15 = vshll.u32 %v677_v54, 8  ;;  %vm454_vm5 = vcmp.lt.s32.totalorder %v1859_v27, 2  ;;  %1258 = vcosq.f32 %v551_v45 }
  0xb3   : > { %v1133_v13 = vmin.u32 %v632_v62, %v1915_v44  ;;  %v652_v7 = vsub.s32 4, %v1895_v55  ;;  %v775_v1 = vand.u32 2139095040, %v1681_v47  ;;  %vm702_vm6 = vcmp.lt.s32.totalorder %v1897_v21, 2 }
  0xb4   : > { %vm703_vm7 = vcmp.lt.s32.totalorder %v1897_v21, 3  ;;  %vm704_vm8 = vcmp.lt.s32.totalorder %v1897_v21, 4  ;;  %v705_v61 = vsel %vm701_vm4, %v685_v56, %v688_v58  ;;  %vm246_vm9 = vweird.f32 %v1524_v3 }
  0xb5   : > { %vm349_vm10 = vweird.f32 %v1526_v4  ;;  %v634_v54 = vclz %v1133_v13  ;;  %v706_v22 = vsel %vm704_vm8, %v694_v24, 2102212464  ;;  %v709_v20 = vsel %vm701_vm4, %v688_v58, %v691_v9 }
  0xb6   : > { %v710_v19 = vsel %vm704_vm8, %v697_v34, 920167782  ;;  %vm452_vm11 = vweird.f32 %v1528_v5  ;;  %v707_v25 = vsel %vm703_vm7, %v691_v9, %v706_v22  ;;  %v713_v32 = vsel %vm701_vm4, %v691_v9, %v694_v24 }
  0xb7   : > { %v711_v31 = vsel %vm703_vm7, %v694_v24, %v710_v19  ;;  %v714_v16 = vsel %vm704_vm8, %v700_v2, 1326507024  ;;  %v460_v38 = vsel %vm458_vm15, %v459_v8, %v1899_v23  ;;  %v1134_v63 = vadd.s32 4294967294, %v634_v54 }
  0xb8   : > { %v712_v59 = vsel %vm702_vm6, %v709_v20, %v711_v31  ;;  %v715_v30 = vsel %vm703_vm7, %v697_v34, %v714_v16  ;;  %v708_v28 = vsel %vm702_vm6, %v705_v61, %v707_v25  ;;  %v776_v23 = vshrl.u32 %v775_v1, 23 }
  0xb9   : > { %v716_v40 = vsel %vm702_vm6, %v713_v32, %v715_v30  ;;  %v1962_v48 = vmul.u32.u64.low %v717_v15, %v712_v59  ;;  %v1963_v52 = vmul.u32.u64.high %v717_v15, %v712_v59, %v1962_v48  ;;  %vm1135_vm13 = vcmp.lt.s32.totalorder %v1134_v63, 0 }
  0xba   : > { %v1965_v56 = vmul.u32.u64.low %v717_v15, %v716_v40  ;;  %v1966_v58 = vmul.u32.u64.high %v717_v15, %v716_v40, %v1965_v56  ;;  %v457_v8 = vsel %vm455_vm0, %v1893_v43, %v456_v10  ;;  %1260 = vsinq.f32 %v551_v45 }
  0xbb   : > { %v637_v62 = vsel %vm1135_vm13, 0, %v1134_v63  ;;  %v653_v9 = vsel %vm568_vm2, %v652_v7, %v1895_v55  ;;  %v1140_v2 = vadd.s32 4294967169, %v776_v23  ;;  %v255_v13 = vsel %vm248_vm1, %v1879_v29, %v1874_v53 }
  0xbc   : > { %v638_v21 = vsub.s32 32, %v637_v62  ;;  %v639_v34 = vshll.u32 %v1915_v44, %v637_v62  ;;  %v642_v24 = vsub.s32 4294967266, %v637_v62  ;;  %vm1981_vm14 = vcmp.le.f32.partialorder %v566_v17, 0.7853982  ;;  %v1986_v55 = vpop.eup %1258 }
  0xbd   : > { %v724_v10 = vmul.u32 %v717_v15, %v708_v28  ;;  %v727_v45 = vadd.s32 1, %v1963_v52  ;;  %v358_v44 = vsel %vm351_vm3, %v1887_v11, %v1883_v6  ;;  %v1996_v50 = vand.u32 3, %v552_v14 }
  0xbe   : > { %v640_v17 = vshrl.u32 %v622_v51, %v638_v21  ;;  %v643_v53 = vadd.s32 127, %v642_v24  ;;  %v461_v29 = vsel %vm454_vm5, %v457_v8, %v460_v38  ;;  %v655_v15 = vsel %vm1981_vm14, 0, %v653_v9 }
  0xbf   : > { %vm726_vm15 = vc.u32 %v1966_v58, %v1962_v48  ;;  %v782_v7 = vadd.s32 1, %v1140_v2  ;;  %v779_v26 = vand.u32 8388607, %v772_v18  ;;  %v2008_v60 = vsel %vm246_vm9, nan, %v255_v13 }
  0xc0   : > { %v641_v1 = vor.u32 %v640_v17, %v639_v34  ;;  %v644_v12 = vshll.u32 %v643_v53, 23  ;;  %v728_v6 = vsel %vm726_vm15, %v727_v45, %v1963_v52  ;;  %v2012_v27 = vsel %vm349_vm10, nan, %v358_v44 }
  0xc1   : > { %v729_v11 = vadd.s32 %v728_v6, %v724_v10  ;;  %vm783_vm12 = vcmp.gt.s32.totalorder %v782_v7, 0  ;;  %v2016_v14 = vsel %vm452_vm11, nan, %v461_v29  ;;  %vm561_vm0 = vcmp.eq.s32.totalorder %v1996_v50, 2 }
  0xc2   : > { %v645_v51 = vor.u32 4788187, %v644_v12  ;;  %v648_v61 = vcvt.s32.f32 %v641_v1  ;;  %v784_v54 = vsel %vm783_vm12, %v782_v7, 0  ;;  %v2019_v22 = vand.u32 3, %v655_v15 }
  0xc3   : > { %v730_v3 = vadd.s32 536870912, %v729_v11  ;;  %v786_v20 = vand.u32 31, %v784_v54  ;;  %v875_v19 = vand.u32 2147483647, %v1684_v57  ;;  %v562_v4 = vxor.u32 2147483648, %v1986_v55 }
  0xc4   : > { %v646_v25 = vand.u32 2147483647, %v645_v51  ;;  %v780_v31 = vor.u32 8388608, %v779_v26  ;;  %v878_v32 = vand.u32 2139095040, %v1684_v57  ;;  %v1261_v5 = vpop.eup %1260  ;;  %v2025_v16 = vadd.s32 %v1962_v48, %v1966_v58 }
  0xc5   : > { %v2027_v38 = vshrl.u32 %v730_v3, 30  ;;  %v785_v63 = vshrl.u32 %v784_v54, 5  ;;  %v787_v59 = vsub.s32 32, %v786_v20  ;;  %v789_v28 = vshll.u32 %v1387_v33, %v786_v20 }
  0xc6   : > { %v649_v30 = vmul.f32 %v648_v61, %v646_v25  ;;  %v792_v40 = vshll.u32 %v1388_v35, %v786_v20  ;;  %v795_v52 = vshll.u32 %v1389_v37, %v786_v20  ;;  %vm558_vm1 = vcmp.eq.s32.totalorder %v1996_v50, 0 }
  0xc7   : > { %v732_v56 = vshll.u32 %v2027_v38, 30  ;;  %v790_v23 = vshrl.u32 %v1388_v35, %v787_v59  ;;  %v798_v48 = vshll.u32 %v1390_v39, %v786_v20  ;;  %v801_v58 = vshll.u32 %v1391_v41, %v786_v20 }
  0xc8   : > { %v650_v8 = vxor.u32 2147483648, %v649_v30  ;;  %v793_v62 = vshrl.u32 %v1389_v37, %v787_v59  ;;  %v796_v9 = vshrl.u32 %v1390_v39, %v787_v59  ;;  %v799_v21 = vshrl.u32 %v1391_v41, %v787_v59 }
  0xc9   : > { %v559_v34 = vxor.u32 2147483648, %v1261_v5  ;;  %v2040_v24 = vsub.s32 %v729_v11, %v732_v56  ;;  %v802_v2 = vshrl.u32 %v1392_v49, %v787_v59  ;;  %v879_v13 = vshrl.u32 %v878_v32, 23 }
  0xca   : > { %v651_v10 = vsel %vm568_vm2, %v650_v8, %v649_v30  ;;  %v788_v45 = vshrl.u32 %v1387_v33, %v787_v59  ;;  %v791_v44 = vor.u32 %v790_v23, %v789_v28  ;;  %v2046_v17 = vshll.u32 %v780_v31, 8 }
  0xcb   : > { %vm557_vm3 = vcmp.lt.s32.totalorder %v1996_v50, 2  ;;  %v654_v53 = vsel %vm1981_vm14, %v1672_v36, %v651_v10  ;;  %v735_v29 = vsub.s32 0, %v2040_v24  ;;  %v794_v15 = vor.u32 %v793_v62, %v792_v40 }
  0xcc   : > { %v800_v7 = vor.u32 %v799_v21, %v798_v48  ;;  %1262 = vcosq.f32 %v654_v53  ;;  %vm671_vm4 = vcmp.lt.s32.totalorder %v1679_v46, 0  ;;  %v797_v1 = vor.u32 %v796_v9, %v795_v52 }
  0xcd   : > { %v803_v12 = vor.u32 %v802_v2, %v801_v58  ;;  %vm804_vm2 = vcmp.lt.s32.totalorder %v785_v63, 1  ;;  %v563_v6 = vsel %vm561_vm0, %v562_v4, %v1261_v5  ;;  %1264 = vsinq.f32 %v654_v53 }
  0xce   : > { %v1137_v26 = vmin.u32 %v735_v29, %v2040_v24  ;;  %v1144_v11 = vadd.s32 4294967169, %v879_v13  ;;  %vm805_vm5 = vcmp.lt.s32.totalorder %v785_v63, 2  ;;  %vm806_vm6 = vcmp.lt.s32.totalorder %v785_v63, 3 }
  0xcf   : > { %vm807_vm7 = vcmp.lt.s32.totalorder %v785_v63, 4  ;;  %v808_v43 = vsel %vm804_vm2, %v788_v45, %v791_v44  ;;  %vm2060_vm8 = vcmp.le.f32.partialorder %v669_v42, 0.7853982  ;;  %v812_v3 = vsel %vm804_vm2, %v791_v44, %v794_v15 }
  0xd0   : > { %v737_v61 = vclz %v1137_v26  ;;  %v809_v54 = vsel %vm807_vm7, %v797_v1, 2102212464  ;;  %v813_v20 = vsel %vm807_vm7, %v800_v7, 920167782  ;;  %vm555_vm9 = vweird.f32 %v1614_v0 }
  0xd1   : > { %v810_v4 = vsel %vm806_vm6, %v794_v15, %v809_v54  ;;  %v814_v25 = vsel %vm806_vm6, %v797_v1, %v813_v20  ;;  %v816_v31 = vsel %vm804_vm2, %v794_v15, %v797_v1  ;;  %v817_v32 = vsel %vm807_vm7, %v803_v12, 1326507024 }
  0xd2   : > { %v1138_v5 = vadd.s32 4294967294, %v737_v61  ;;  %v755_v42 = vsub.s32 4, %v2027_v38  ;;  %v815_v59 = vsel %vm805_vm5, %v812_v3, %v814_v25  ;;  %v818_v30 = vsel %vm806_vm6, %v800_v7, %v817_v32 }
  0xd3   : > { %v560_v28 = vsel %vm558_vm1, %v1986_v55, %v559_v34  ;;  %v819_v40 = vsel %vm805_vm5, %v816_v31, %v818_v30  ;;  %v2077_v52 = vmul.u32.u64.low %v2046_v17, %v815_v59  ;;  %v2078_v56 = vmul.u32.u64.high %v2046_v17, %v815_v59, %v2077_v52 }
  0xd4   : > { %vm1139_vm10 = vcmp.lt.s32.totalorder %v1138_v5, 0  ;;  %v811_v23 = vsel %vm805_vm5, %v808_v43, %v810_v4  ;;  %v2083_v48 = vmul.u32.u64.low %v2046_v17, %v819_v40  ;;  %v2084_v58 = vmul.u32.u64.high %v2046_v17, %v819_v40, %v2083_v48 }
  0xd5   : > { %vm661_vm11 = vcmp.eq.s32.totalorder %v2019_v22, 0  ;;  %vm664_vm13 = vcmp.eq.s32.totalorder %v2019_v22, 2  ;;  %v740_v8 = vsel %vm1139_vm10, 0, %v1138_v5  ;;  %v885_v55 = vadd.s32 1, %v1144_v11 }
  0xd6   : > { %v741_v62 = vsub.s32 32, %v740_v8  ;;  %v742_v9 = vshll.u32 %v2040_v24, %v740_v8  ;;  %v745_v21 = vsub.s32 4294967266, %v740_v8  ;;  %v756_v34 = vsel %vm671_vm4, %v755_v42, %v2027_v38  ;;  %v1263_v63 = vpop.eup %1262 }
  0xd7   : > { %v564_v2 = vsel %vm557_vm3, %v560_v28, %v563_v6  ;;  %vm658_vm14 = vweird.f32 %v1672_v36  ;;  %v827_v13 = vmul.u32 %v2046_v17, %v811_v23  ;;  %v830_v10 = vadd.s32 1, %v2078_v56  ;;  %v1265_v45 = vpop.eup %1264 }
  0xd8   : > { %vm886_vm15 = vcmp.gt.s32.totalorder %v885_v55, 0  ;;  %v665_v44 = vxor.u32 2147483648, %v1263_v63  ;;  %v743_v24 = vshrl.u32 %v2025_v16, %v741_v62  ;;  %v746_v53 = vadd.s32 127, %v745_v21 }
  0xd9   : > { %v882_v29 = vand.u32 8388607, %v875_v19  ;;  %v662_v38 = vxor.u32 2147483648, %v1265_v45  ;;  %v758_v50 = vsel %vm2060_vm8, 0, %v756_v34  ;;  %vm829_vm12 = vc.u32 %v2084_v58, %v2077_v52 }
  0xda   : > { %v887_v15 = vsel %vm886_vm15, %v885_v55, 0  ;;  %vm660_vm0 = vcmp.lt.s32.totalorder %v2019_v22, 2  ;;  %v744_v17 = vor.u32 %v743_v24, %v742_v9  ;;  %v747_v7 = vshll.u32 %v746_v53, 23 }
  0xdb   : > { %v831_v1 = vsel %vm829_vm12, %v830_v10, %v2078_v56  ;;  %v663_v16 = vsel %vm661_vm11, %v1263_v63, %v662_v38  ;;  %v666_v12 = vsel %vm664_vm13, %v665_v44, %v1265_v45  ;;  %v889_v26 = vand.u32 31, %v887_v15 }
  0xdc   : > { %v832_v6 = vadd.s32 %v831_v1, %v827_v13  ;;  %v565_v11 = vsel %vm555_vm9, nan, %v564_v2  ;;  %v748_v43 = vor.u32 4788187, %v747_v7  ;;  %v751_v61 = vcvt.s32.f32 %v744_v17 }
  0xdd   : > { %v2112_v54 = vand.u32 3, %v758_v50  ;;  %v883_v20 = vor.u32 8388608, %v882_v29  ;;  %v888_v4 = vshrl.u32 %v887_v15, 5  ;;  %v890_v25 = vsub.s32 32, %v889_v26 }
  0xde   : > { %v833_v3 = vadd.s32 536870912, %v832_v6  ;;  %v667_v31 = vsel %vm660_vm0, %v663_v16, %v666_v12  ;;  %v749_v32 = vand.u32 2147483647, %v748_v43  ;;  %v892_v5 = vshll.u32 %v1387_v33, %v889_v26 }
  0xdf   : > { %v895_v42 = vshll.u32 %v1388_v35, %v889_v26  ;;  %v893_v0 = vshrl.u32 %v1388_v35, %v890_v25  ;;  %v896_v30 = vshrl.u32 %v1389_v37, %v890_v25  ;;  %v898_v28 = vshll.u32 %v1389_v37, %v889_v26 }
  0xe0   : > { %v2118_v59 = vshrl.u32 %v833_v3, 30  ;;  %v752_v40 = vmul.f32 %v751_v61, %v749_v32  ;;  %v899_v56 = vshrl.u32 %v1390_v39, %v890_v25  ;;  %v901_v23 = vshll.u32 %v1390_v39, %v889_v26 }
  0xe1   : > { %v902_v22 = vshrl.u32 %v1391_v41, %v890_v25  ;;  %v904_v8 = vshll.u32 %v1391_v41, %v889_v26  ;;  %v978_v55 = vmul.f32 0.5, %v2008_v60  ;;  %v979_v62 = vmul.f32 0.5, %v2012_v27 }
  0xe2   : > { %v835_v48 = vshll.u32 %v2118_v59, 30  ;;  %v668_v35 = vsel %vm658_vm14, nan, %v667_v31  ;;  %v753_v9 = vxor.u32 2147483648, %v752_v40  ;;  %v905_v37 = vshrl.u32 %v1392_v49, %v890_v25 }
  0xe3   : > { %v2133_v21 = vshll.u32 %v883_v20, 8  ;;  %v891_v39 = vshrl.u32 %v1387_v33, %v890_v25  ;;  %v894_v63 = vor.u32 %v893_v0, %v892_v5  ;;  %v897_v2 = vor.u32 %v896_v30, %v895_v42  ;;  %v1278_v0 = vld [vmem:[%s1515_s30] sm:$0xff] }
  0xe4   : > { %v2135_v34 = vsub.s32 %v832_v6, %v835_v48  ;;  %v754_v41 = vsel %vm671_vm4, %v753_v9, %v752_v40  ;;  %v900_v60 = vor.u32 %v899_v56, %v898_v28  ;;  %v903_v13 = vor.u32 %v902_v22, %v901_v23  ;;  %v1279_v56 = vld [vmem:[%s1515_s30 + $0x8] sm:$0xff]  ;;  %v1280_v23 = vld [vmem:[%s1515_s30 + $0x10] sm:$0xff]  ;;  %v1281_v22 = vld [vmem:[%s1515_s30 + $0x18] sm:$0xff] }
  0xe5   : > { %vm907_vm1 = vcmp.lt.s32.totalorder %v888_v4, 1  ;;  %v757_v36 = vsel %vm2060_vm8, %v1679_v46, %v754_v41  ;;  %v906_v27 = vor.u32 %v905_v37, %v904_v8  ;;  %vm910_vm3 = vcmp.lt.s32.totalorder %v888_v4, 4 }
  0xe6   : > { %v838_v49 = vsub.s32 0, %v2135_v34  ;;  %1266 = vcosq.f32 %v757_v36  ;;  %vm908_vm2 = vcmp.lt.s32.totalorder %v888_v4, 2  ;;  %vm909_vm5 = vcmp.lt.s32.totalorder %v888_v4, 3 }
  0xe7   : > { %v912_v33 = vsel %vm910_vm3, %v900_v60, 2102212464  ;;  %1268 = vsinq.f32 %v757_v36  ;;  %v911_v45 = vsel %vm907_vm1, %v891_v39, %v894_v63  ;;  %v915_v44 = vsel %vm907_vm1, %v894_v63, %v897_v2 }
  0xe8   : > { %v1141_v10 = vmin.u32 %v838_v49, %v2135_v34  ;;  %vm767_vm4 = vcmp.eq.s32.totalorder %v2112_v54, 2  ;;  %v913_v51 = vsel %vm909_vm5, %v897_v2, %v912_v33  ;;  %v916_v24 = vsel %vm910_vm3, %v903_v13, 920167782 }
  0xe9   : > { %v919_v53 = vsel %vm907_vm1, %v897_v2, %v900_v60  ;;  %v980_v29 = vmul.f32 0.5, %v2016_v14  ;;  %vm764_vm6 = vcmp.eq.s32.totalorder %v2112_v54, 0  ;;  %v917_v50 = vsel %vm909_vm5, %v900_v60, %v916_v24 }
  0xea   : > { %v840_v38 = vclz %v1141_v10  ;;  %v920_v15 = vsel %vm910_vm3, %v906_v27, 1326507024  ;;  %v981_v17 = vmul.f32 0.5, %v565_v11  ;;  %vm763_vm7 = vcmp.lt.s32.totalorder %v2112_v54, 2 }
  0xeb   : > { %v914_v7 = vsel %vm908_vm2, %v911_v45, %v913_v51  ;;  %v918_v1 = vsel %vm908_vm2, %v915_v44, %v917_v50  ;;  %v921_v16 = vsel %vm909_vm5, %v903_v13, %v920_v15  ;;  %v982_v12 = vmul.f32 0.5, %v668_v35 }
  0xec   : > { %vm761_vm8 = vweird.f32 %v1679_v46  ;;  %v1142_v14 = vadd.s32 4294967294, %v840_v38  ;;  %v922_v6 = vsel %vm908_vm2, %v919_v53, %v921_v16  ;;  %v828_v11 = vadd.s32 %v2077_v52, %v2084_v58  ;;  %v1283_v38 = vld [vmem:[%s1515_s30 + $0x28] sm:$0xff] }
  0xed   : > { %v2163_v26 = vmul.u32.u64.low %v2133_v21, %v918_v1  ;;  %v2164_v43 = vmul.u32.u64.high %v2133_v21, %v918_v1, %v2163_v26  ;;  %v2170_v61 = vmul.u32.u64.low %v2133_v21, %v922_v6  ;;  %v2171_v3 = vmul.u32.u64.high %v2133_v21, %v922_v6, %v2170_v61 }
  0xee   : > { %v986_v20 = vadd.f32 0.5, %v978_v55  ;;  %vm1143_vm9 = vcmp.lt.s32.totalorder %v1142_v14, 0  ;;  %v930_v25 = vmul.u32 %v2133_v21, %v914_v7  ;;  %v987_v4 = vadd.f32 0.5, %v979_v62  ;;  %v1282_v21 = vld [vmem:[%s1515_s30 + $0x20] sm:$0xff] }
  0xef   : > { %v988_v31 = vadd.f32 0.5, %v980_v29  ;;  %v843_v32 = vsel %vm1143_vm9, 0, %v1142_v14  ;;  %v989_v5 = vadd.f32 0.5, %v981_v17  ;;  %v990_v42 = vadd.f32 0.5, %v982_v12 }
  0xf0   : > { %vm994_vm10 = vcmp.lt.f32.partialorder %v1278_v0, 5.0  ;;  %v844_v30 = vsub.s32 32, %v843_v32  ;;  %v845_v52 = vshll.u32 %v2135_v34, %v843_v32  ;;  %v848_v58 = vsub.s32 4294967266, %v843_v32  ;;  %v1267_v40 = vpop.eup %1266 }
  0xf1   : > { %v933_v28 = vadd.s32 1, %v2164_v43  ;;  %vm932_vm11 = vc.u32 %v2171_v3, %v2163_v26  ;;  %vm995_vm13 = vcmp.lt.f32.partialorder %v1279_v56, 5.0  ;;  %vm996_vm14 = vcmp.lt.f32.partialorder %v1280_v23, 5.0  ;;  %v1269_v48 = vpop.eup %1268 }
  0xf2   : > { %vm997_vm15 = vcmp.lt.f32.partialorder %v1281_v22, 5.0  ;;  %v768_v8 = vxor.u32 2147483648, %v1267_v40  ;;  %v846_v55 = vshrl.u32 %v828_v11, %v844_v30  ;;  %v849_v62 = vadd.s32 127, %v848_v58 }
  0xf3   : > { %v934_v35 = vsel %vm932_vm11, %v933_v28, %v2164_v43  ;;  %v765_v9 = vxor.u32 2147483648, %v1269_v48  ;;  %vm998_vm12 = vcmp.lt.f32.partialorder %v1282_v21, 5.0  ;;  %v1002_v34 = vsel %vm994_vm10, %v986_v20, 0.0 }
  0xf4   : > { %v935_v37 = vadd.s32 %v934_v35, %v930_v25  ;;  %v769_v39 = vsel %vm767_vm4, %v768_v8, %v1269_v48  ;;  %v847_v63 = vor.u32 %v846_v55, %v845_v52  ;;  %v850_v2 = vshll.u32 %v849_v62, 23  ;;  %1010 = vst [vmem:[%s2190_s17] sm:$0xff] %v1002_v34  ;;  %v1284_v35 = vld [vmem:[%s1515_s30 + $0x30] sm:$0xff] }
  0xf5   : > { %v1003_v41 = vsel %vm995_vm13, %v987_v4, 0.0  ;;  %v766_v60 = vsel %vm764_vm6, %v1267_v40, %v765_v9  ;;  %v1004_v36 = vsel %vm996_vm14, %v988_v31, 0.0  ;;  %v1005_v49 = vsel %vm997_vm15, %v989_v5, 0.0 }
  0xf6   : > { %v936_v13 = vadd.s32 536870912, %v935_v37  ;;  %1011 = vst [vmem:[%s2190_s17 + $0x8] sm:$0xff] %v1003_v41  ;;  %v770_v27 = vsel %vm763_vm7, %v766_v60, %v769_v39  ;;  %v851_v33 = vor.u32 4788187, %v850_v2  ;;  %v854_v10 = vcvt.s32.f32 %v847_v63  ;;  %1012 = vst [vmem:[%s2190_s17 + $0x10] sm:$0xff] %v1004_v36 }
  0xf7   : > { %v1006_v45 = vsel %vm998_vm12, %v990_v42, 0.0  ;;  %1013 = vst [vmem:[%s2190_s17 + $0x18] sm:$0xff] %v1005_v49  ;;  %v771_v44 = vsel %vm761_vm8, nan, %v770_v27  ;;  %vm999_vm0 = vcmp.lt.f32.partialorder %v1283_v38, 5.0  ;;  %vm774_vm1 = vcmp.lt.s32.totalorder %v1681_v47, 0 }
  0xf8   : > { %v2205_v51 = vshrl.u32 %v936_v13, 30  ;;  %1014 = vst [vmem:[%s2190_s17 + $0x20] sm:$0xff] %v1006_v45  ;;  %v852_v24 = vand.u32 2147483647, %v851_v33  ;;  %v983_v53 = vmul.f32 0.5, %v771_v44  ;;  %v858_v7 = vsub.s32 4, %v2118_v59 }
  0xf9   : > { %vm2213_vm3 = vcmp.le.f32.partialorder %v772_v18, 0.7853982  ;;  %v931_v20 = vadd.s32 %v2163_v26, %v2171_v3  ;;  %vm864_vm7 = vweird.f32 %v1681_v47  ;;  %vm877_vm8 = vcmp.lt.s32.totalorder %v1684_v57, 0  ;;  %v1285_v44 = vld [vmem:[%s1515_s30 + $0x38] sm:$0xff] }
  0xfa   : > { %v938_v29 = vshll.u32 %v2205_v51, 30  ;;  %v855_v54 = vmul.f32 %v854_v10, %v852_v24  ;;  %v991_v50 = vadd.f32 0.5, %v983_v53  ;;  %v859_v43 = vsel %vm774_vm1, %v858_v7, %v2118_v59 }
  0xfb   : > { %v861_v11 = vsel %vm2213_vm3, 0, %v859_v43  ;;  %vm1000_vm9 = vcmp.lt.f32.partialorder %v1284_v35, 5.0  ;;  %vm876_vm10 = vcmp.le.f32.partialorder %v875_v19, 0.7853982  ;;  %vm967_vm15 = vweird.f32 %v1684_v57 }
  0xfc   : > { %v939_v15 = vsub.s32 %v935_v37, %v938_v29  ;;  %v856_v17 = vxor.u32 2147483648, %v855_v54  ;;  %v1007_v1 = vsel %vm999_vm0, %v991_v50, 0.0  ;;  %v865_v25 = vand.u32 3, %v861_v11 }
  0xfd   : > { %1015 = vst [vmem:[%s2190_s17 + $0x28] sm:$0xff] %v1007_v1  ;;  %vm1001_vm12 = vcmp.lt.f32.partialorder %v1285_v44, 5.0 }
  0xfe   : > { %v941_v16 = vsub.s32 0, %v939_v15  ;;  %v857_v12 = vsel %vm774_vm1, %v856_v17, %v855_v54  ;;  %vm870_vm5 = vcmp.eq.s32.totalorder %v865_v25, 2  ;;  %vm867_vm4 = vcmp.eq.s32.totalorder %v865_v25, 0 }
  0xff   : > { %v860_v14 = vsel %vm2213_vm3, %v1681_v47, %v857_v12  ;;  %vm866_vm6 = vcmp.lt.s32.totalorder %v865_v25, 2  ;;  %v961_v47 = vsub.s32 4, %v2205_v51 }
 0x100   : > { %v1145_v6 = vmin.u32 %v941_v16, %v939_v15  ;;  %1270 = vcosq.f32 %v860_v14 }
 0x101   : > { %1272 = vsinq.f32 %v860_v14  ;;  %v962_v63 = vsel %vm877_vm8, %v961_v47, %v2205_v51 }
 0x102   : > { %v943_v18 = vclz %v1145_v6  ;;  %v964_v2 = vsel %vm876_vm10, 0, %v962_v63 }
 0x103   : > { %v968_v41 = vand.u32 3, %v964_v2 }
 0x104   : > { %v1146_v61 = vadd.s32 4294967294, %v943_v18 }
 0x105   : > { %vm973_vm11 = vcmp.eq.s32.totalorder %v968_v41, 2  ;;  %vm970_vm13 = vcmp.eq.s32.totalorder %v968_v41, 0  ;;  %vm969_vm14 = vcmp.lt.s32.totalorder %v968_v41, 2 }
 0x106   : > { %vm1147_vm2 = vcmp.lt.s32.totalorder %v1146_v61, 0 }
 0x107   : > { %v946_v4 = vsel %vm1147_vm2, 0, %v1146_v61 }
 0x108   : > { %v947_v31 = vsub.s32 32, %v946_v4  ;;  %v948_v32 = vshll.u32 %v939_v15, %v946_v4  ;;  %v951_v5 = vsub.s32 4294967266, %v946_v4 }
 0x10a   : > { %v949_v42 = vshrl.u32 %v931_v20, %v947_v31  ;;  %v952_v0 = vadd.s32 127, %v951_v5  ;;  %v1271_v30 = vpop.eup %1270 }
 0x10b   : > { %v1273_v59 = vpop.eup %1272  ;;  %v871_v52 = vxor.u32 2147483648, %v1271_v30 }
 0x10c   : > { %v950_v58 = vor.u32 %v949_v42, %v948_v32  ;;  %v953_v28 = vshll.u32 %v952_v0, 23  ;;  %v868_v40 = vxor.u32 2147483648, %v1273_v59 }
 0x10d   : > { %v872_v26 = vsel %vm870_vm5, %v871_v52, %v1273_v59 }
 0x10e   : > { %v954_v3 = vor.u32 4788187, %v953_v28  ;;  %v957_v56 = vcvt.s32.f32 %v950_v58  ;;  %v869_v23 = vsel %vm867_vm4, %v1271_v30, %v868_v40 }
 0x10f   : > { %v873_v22 = vsel %vm866_vm6, %v869_v23, %v872_v26 }
 0x110   : > { %v955_v48 = vand.u32 2147483647, %v954_v3  ;;  %v874_v8 = vsel %vm864_vm7, nan, %v873_v22 }
 0x111   : > { %v984_v62 = vmul.f32 0.5, %v874_v8 }
 0x112   : > { %v958_v55 = vmul.f32 %v957_v56, %v955_v48 }
 0x113   : > { %v992_v37 = vadd.f32 0.5, %v984_v62 }
 0x114   : > { %v959_v9 = vxor.u32 2147483648, %v958_v55 }
 0x115   : > { %v1008_v34 = vsel %vm1000_vm9, %v992_v37, 0.0 }
 0x116   : > { %v960_v21 = vsel %vm877_vm8, %v959_v9, %v958_v55  ;;  %1016 = vst [vmem:[%s2190_s17 + $0x30] sm:$0xff] %v1008_v34 }
 0x117   : > { %v963_v39 = vsel %vm876_vm10, %v1684_v57, %v960_v21 }
 0x118   : > { %1274 = vcosq.f32 %v963_v39 }
 0x119   : > { %1276 = vsinq.f32 %v963_v39 }
 0x122   : > { %v1275_v60 = vpop.eup %1274 }
 0x123   : > { %v1277_v19 = vpop.eup %1276  ;;  %v974_v13 = vxor.u32 2147483648, %v1275_v60 }
 0x124   : > { %v971_v36 = vxor.u32 2147483648, %v1277_v19 }
 0x125   : > { %v975_v49 = vsel %vm973_vm11, %v974_v13, %v1277_v19 }
 0x126   : > { %v972_v27 = vsel %vm970_vm13, %v1275_v60, %v971_v36 }
 0x127   : > { %v976_v33 = vsel %vm969_vm14, %v972_v27, %v975_v49 }
 0x128   : > { %v977_v10 = vsel %vm967_vm15, nan, %v976_v33 }
 0x129   : > { %v985_v45 = vmul.f32 0.5, %v977_v10 }
 0x12b   : > { %v993_v51 = vadd.f32 0.5, %v985_v45 }
 0x12d   : > { %v1009_v57 = vsel %vm1001_vm12, %v993_v51, 0.0 }
 0x12e   : > { %1017 = vst [vmem:[%s2190_s17 + $0x38] sm:$0xff] %v1009_v57 }
 0x12f   : > { %1329 = shalt.err (!%p1326_p1)
}
 0x130   : > { %s1330_s13 = scalar_lea.hbm %s2243_s2, 1024  ;;  %s1334_s20 = scalar_lea.hbm %s2290_s1, 4096 }
 0x131   : > { %p1331_p3 = scmp.ne.s32.totalorder %s2243_s2, %s1330_s13  ;;  %p1335_p0 = scmp.lt.u32.totalorder %s2243_s2, %s2290_s1 }
 0x132   : > { %p1336_p2 = scmp.lt.u32.totalorder %s1334_s20, %s1330_s13  ;;  %p1338_p6 = scmp.lt.u32.totalorder %s1330_s13, %s2243_s2 }
 0x133   : > { %p1332_p4 = pnand %p1331_p3, %p2311_p10 }
 0x134   : > { %p1337_p7 = por %p1336_p2, %p1335_p0 }
 0x135   : > { %p1333_p5 = pneg %p1332_p4 }
 0x136   : > { %p1339_p11 = por %p1338_p6, %p1337_p7 }
 0x138   : > { %p1340_p12 = pnand %p1339_p11, %p1333_p5 }
 0x13a   : > { %1343 = shalt.err (!%p1340_p12)
}
 0x13b   : > { %s1394_s24 = smov 512   ;;  %s1395_s26 = smov 32  }
 0x13c   : > { %1192 = dma.vmem_to_hbm [thread:$0]  (%p2311_p10), %s2245_s27, 1024, %s2243_s2, %s1019_s3, %s1394_s24, %s1394_s24, %s1395_s26  }
 0x13d PF: > { %p1203_p8 = scmp.ge.s32.totalorder %s1382_s9, 2  ;;  %s1048_s30 = sand.u32 1, %s1370_s6  }
 0x13e   : > { %p2312_p9 = scmp.ne.s32.totalorder %s2295_s19, 0  ;;  %s1049_s17 = scalar_lea.sflag [#allocation4], %s1048_s30 }
 0x140   : > { %p1199_p13 = pnand %p1203_p8, %p2312_p9 }
 0x142   : > { %1365 = dma.done.wait (!%p1199_p13), %s1049_s17, 1024  }
 0x143   : > { %1367 = vsyncadd (!%p1199_p13), %s1049_s17, 4294966272  ;;  %p14_p1 = scmp.ge.s32.totalorder %s1431_s12, 6   ;;  %s2313_s6 = smov %s1374_s7 }
 0x144   : > { %s2314_s7 = smov %s1378_s8  ;;  %s2315_s8 = smov %s1443_s15 }
 0x145   : > { %s2316_s9 = smov %s1431_s12  ;;  %16 = sbr.rel (!%p14_p1) target bundleno = 5 (0x5), region = 69 }
 0x14c   :  { %1054 = vsyncpa [#allocation3], 1 }
 0x14d   :  { %1056 = vsyncpa [#allocation3 + $0x1], 1 }
 0x14e   :  { %1057 = vsyncpa [#allocation4], 1 }
 0x14f   :  { %1059 = vsyncpa [#allocation4 + $0x1], 1 }

</bundles_post_ra>
